<compile_context>
chip_gen: v5e
topology: v5e:2x2
jax: 0.10.0
libtpu: 0.0.40
codegen_flags: <defaults>
</compile_context>

<pallas_src>
import jax
import jax.numpy as jnp
from jax.experimental import pallas as pl
from jax.experimental.pallas import tpu as pltpu


def _round_up(n, m):
    return ((n + m - 1) // m) * m


def _cdiv(a, b):
    return -(-a // b)


# --------------------------------------------------------------------------
# Kernel: fused fc1..fc4 + ReLUs for one batch tile.
# bf16 operands on the MXU, f32 accumulation, f32 biases, bf16 output slab.
# --------------------------------------------------------------------------
def _qnet_kernel(x_ref,
                 w1_ref, b1_ref,
                 w2_ref, b2_ref,
                 w3_ref, b3_ref,
                 w4_ref, b4_ref,
                 o_ref):
    # in-kernel f32 -> bf16 cast of the activations (VPU, essentially free)
    x = x_ref[...].astype(jnp.bfloat16)

    # fc1 + relu
    h = jnp.dot(x, w1_ref[...], preferred_element_type=jnp.float32) + b1_ref[...]
    h = jnp.maximum(h, 0.0)
    # dropout(p=0.1) -> identity (eval mode)

    # fc2 + relu
    h = jnp.dot(h.astype(jnp.bfloat16), w2_ref[...],
                preferred_element_type=jnp.float32) + b2_ref[...]
    h = jnp.maximum(h, 0.0)
    # dropout(p=0.1) -> identity (eval mode)

    # fc3 + relu
    h = jnp.dot(h.astype(jnp.bfloat16), w3_ref[...],
                preferred_element_type=jnp.float32) + b3_ref[...]
    h = jnp.maximum(h, 0.0)

    # fc4 (no activation); output lane-padded to 128, stored as bf16
    o_ref[...] = (jnp.dot(h.astype(jnp.bfloat16), w4_ref[...],
                          preferred_element_type=jnp.float32)
                  + b4_ref[...]).astype(o_ref.dtype)


# --------------------------------------------------------------------------
# One-time parameter preparation (hoisted out of the per-call path).
# --------------------------------------------------------------------------
def prepare_params(params):
    """Cast weights to bf16 and zero-pad fc4 to 128 lanes.  Call once."""
    w1, b1, w2, b2, w3, b3, w4, b4 = params
    da = w4.shape[1]
    n_pad = _round_up(max(da, 128), 128)

    w4p = jnp.zeros((w4.shape[0], n_pad), jnp.bfloat16)
    w4p = w4p.at[:, :da].set(w4.astype(jnp.bfloat16))
    b4p = jnp.zeros((1, n_pad), jnp.float32)
    b4p = b4p.at[:, :da].set(b4.reshape(1, -1).astype(jnp.float32))

    tensors = (
        w1.astype(jnp.bfloat16), b1.reshape(1, -1).astype(jnp.float32),
        w2.astype(jnp.bfloat16), b2.reshape(1, -1).astype(jnp.float32),
        w3.astype(jnp.bfloat16), b3.reshape(1, -1).astype(jnp.float32),
        w4p, b4p,
    )
    # Materialize now so the casts/pads never run inside qnet_forward.
    tensors = tuple(jax.block_until_ready(t) for t in tensors)
    return {"tensors": tensors, "dimension_action": da, "n_pad": n_pad}


def _choose_tile(B, tile_b):
    """Batch-tile rows per grid step (multiple of 8)."""
    tb_cap = max(8, min(int(tile_b), 4096))
    if B <= 128:
        # tiny batch: single grid step, latency-dominated
        return _round_up(max(B, 8), 8)
    # larger batch: even number of grid steps >= 2 so v7x megacore splits the
    # grid evenly; each step a multiple of 8 rows, capped at tb_cap.
    steps = 2
    while _round_up(_cdiv(B, steps), 8) > tb_cap:
        steps += 2
    return _round_up(_cdiv(B, steps), 8)


# --------------------------------------------------------------------------
# Forward wrapper.
# --------------------------------------------------------------------------
def qnet_forward(x, prepped, *, tile_b=2048):
    """x: [B, dimension_states] f32 -> [B, dimension_action] f32."""
    w1b, b1, w2b, b2, w3b, b3, w4p, b4p = prepped["tensors"]
    da = prepped["dimension_action"]
    n_pad = prepped["n_pad"]

    B, ds = x.shape
    tb = _choose_tile(B, tile_b)
    b_pad = _round_up(B, tb)
    grid = b_pad // tb

    if b_pad != B:
        x = jnp.pad(x, ((0, b_pad - B), (0, 0)))  # padded rows sliced off below

    def _const_spec(arr):
        # Full-array block; same block every grid step => stays VMEM-resident.
        return pl.BlockSpec(arr.shape, lambda i: (0, 0))

    in_specs = [
        pl.BlockSpec((tb, ds), lambda i: (i, 0)),   # x: tiled over batch (f32)
        _const_spec(w1b), _const_spec(b1),
        _const_spec(w2b), _const_spec(b2),
        _const_spec(w3b), _const_spec(b3),
        _const_spec(w4p), _const_spec(b4p),
    ]
    out_specs = pl.BlockSpec((tb, n_pad), lambda i: (i, 0))

    out_pad = pl.pallas_call(
        _qnet_kernel,
        out_shape=jax.ShapeDtypeStruct((b_pad, n_pad), jnp.bfloat16),
        grid=(grid,),
        in_specs=in_specs,
        out_specs=out_specs,
        compiler_params=pltpu.CompilerParams(
            dimension_semantics=("parallel",),        # megacore sharding on v7x
            vmem_limit_bytes=48 * 1024 * 1024,        # > v5e 16MiB default, < v7x 64MiB
        ),
    )(x, w1b, b1, w2b, b2, w3b, b3, w4p, b4p)

    return out_pad[:B, :da].astype(jnp.float32)


# --------------------------------------------------------------------------
# Init + pure-JAX reference.
# --------------------------------------------------------------------------
def init_params(key, dimension_states, dimension_action):
    """nn.Linear-style U(-1/sqrt(fan_in), 1/sqrt(fan_in)) init.

    Weights stored as (in_features, out_features) — transposed vs PyTorch —
    so the kernel computes x @ W + b == x @ W_pt.T + b.
    """
    dims = [(dimension_states, 256), (256, 256), (256, 128),
            (128, dimension_action)]
    params = []
    for (fan_in, fan_out) in dims:
        key, kw, kb = jax.random.split(key, 3)
        bound = 1.0 / jnp.sqrt(jnp.float32(fan_in))
        w = jax.random.uniform(kw, (fan_in, fan_out), jnp.float32,
                               minval=-bound, maxval=bound)
        b = jax.random.uniform(kb, (1, fan_out), jnp.float32,
                               minval=-bound, maxval=bound)
        params += [w, b]
    return tuple(params)


def qnet_reference(x, params):
    """Pure-JAX reference mirroring the kernel's bf16-weight / f32-accum math."""
    w1, b1, w2, b2, w3, b3, w4, b4 = params
    bf, f32 = jnp.bfloat16, jnp.float32
    h = x.astype(bf)
    h = jnp.maximum(jnp.dot(h, w1.astype(bf), preferred_element_type=f32) + b1, 0.0)
    h = jnp.maximum(jnp.dot(h.astype(bf), w2.astype(bf), preferred_element_type=f32) + b2, 0.0)
    h = jnp.maximum(jnp.dot(h.astype(bf), w3.astype(bf), preferred_element_type=f32) + b3, 0.0)
    return jnp.dot(h.astype(bf), w4.astype(bf), preferred_element_type=f32) + b4


if __name__ == "__main__":
    dimension_states = 16   # observation size
    dimension_action = 4    # number of discrete actions

    key = jax.random.PRNGKey(0)
    key, kx = jax.random.split(key)
    params = init_params(key, dimension_states, dimension_action)
    prepped = prepare_params(params)          # one-time prep (hoisted)

    # Small-batch path (single grid step) — typical RL inference.
    batch = 2
    x_small = jax.random.normal(kx, (batch, dimension_states), jnp.float32)
    out_small = jax.block_until_ready(qnet_forward(x_small, prepped))
    ref_small = qnet_reference(x_small, params)
    assert out_small.shape == (batch, dimension_action)
    assert jnp.allclose(out_small, ref_small, atol=2e-2, rtol=2e-2), \
        "small-batch mismatch vs reference"

    # Multi-tile grid path (exercises batch padding + even >=2-step grid).
    key, kx2 = jax.random.split(key)
    batch_big = 600
    x_big = jax.random.normal(kx2, (batch_big, dimension_states), jnp.float32)
    out_big = jax.block_until_ready(qnet_forward(x_big, prepped))
    ref_big = qnet_reference(x_big, params)
    assert out_big.shape == (batch_big, dimension_action)
    assert jnp.allclose(out_big, ref_big, atol=2e-2, rtol=2e-2), \
        "large-batch mismatch vs reference"

    print("KERNEL_OK")
</pallas_src>

<mosaic_0001>
module attributes {stable_mosaic.version = 11 : i64} {
  func.func @_qnet_kernel(%arg0: i32, %arg1: memref<8x16xf32, #tpu.memory_space<vmem>>, %arg2: memref<16x256xbf16, #tpu.memory_space<vmem>>, %arg3: memref<1x256xf32, #tpu.memory_space<vmem>>, %arg4: memref<256x256xbf16, #tpu.memory_space<vmem>>, %arg5: memref<1x256xf32, #tpu.memory_space<vmem>>, %arg6: memref<256x128xbf16, #tpu.memory_space<vmem>>, %arg7: memref<1x128xf32, #tpu.memory_space<vmem>>, %arg8: memref<128x128xbf16, #tpu.memory_space<vmem>>, %arg9: memref<1x128xf32, #tpu.memory_space<vmem>>, %arg10: memref<8x128xbf16, #tpu.memory_space<vmem>>) attributes {dimension_semantics = [#tpu.dimension_semantics<parallel>], iteration_bounds = array<i64: 1>, scalar_prefetch = 0 : i64, scratch_operands = 0 : i64, tpu.core_type = #tpu.core_type<tc>, window_params = [{transform_indices = @transform_0, window_bounds = array<i64: 8, 16>}, {pipeline_mode = #tpu.pipeline_mode<synchronous>, transform_indices = @transform_1, window_bounds = array<i64: 16, 256>}, {pipeline_mode = #tpu.pipeline_mode<synchronous>, transform_indices = @transform_2, window_bounds = array<i64: 1, 256>}, {pipeline_mode = #tpu.pipeline_mode<synchronous>, transform_indices = @transform_3, window_bounds = array<i64: 256, 256>}, {pipeline_mode = #tpu.pipeline_mode<synchronous>, transform_indices = @transform_4, window_bounds = array<i64: 1, 256>}, {pipeline_mode = #tpu.pipeline_mode<synchronous>, transform_indices = @transform_5, window_bounds = array<i64: 256, 128>}, {pipeline_mode = #tpu.pipeline_mode<synchronous>, transform_indices = @transform_6, window_bounds = array<i64: 1, 128>}, {pipeline_mode = #tpu.pipeline_mode<synchronous>, transform_indices = @transform_7, window_bounds = array<i64: 128, 128>}, {pipeline_mode = #tpu.pipeline_mode<synchronous>, transform_indices = @transform_8, window_bounds = array<i64: 1, 128>}, {transform_indices = @transform_9, window_bounds = array<i64: 8, 128>}]} {
    %c0 = arith.constant 0 : index
    %c0_0 = arith.constant 0 : index
    %0 = vector.load %arg1[%c0, %c0_0] : memref<8x16xf32, #tpu.memory_space<vmem>>, vector<8x16xf32>
    %1 = arith.truncf %0 : vector<8x16xf32> to vector<8x16xbf16>
    %c0_1 = arith.constant 0 : index
    %c0_2 = arith.constant 0 : index
    %2 = vector.load %arg2[%c0_1, %c0_2] : memref<16x256xbf16, #tpu.memory_space<vmem>>, vector<16x256xbf16>
    %cst = arith.constant dense<0.000000e+00> : vector<8x256xf32>
    %3 = tpu.matmul %1, %2, %cst {dimension_numbers = #tpu.dot_dimension_numbers<[1], [0], [0], [1], [0, 0, 1, 1], [], []>} : vector<8x16xbf16>, vector<16x256xbf16>, vector<8x256xf32> -> vector<8x256xf32>
    %c0_3 = arith.constant 0 : index
    %c0_4 = arith.constant 0 : index
    %4 = vector.load %arg3[%c0_3, %c0_4] : memref<1x256xf32, #tpu.memory_space<vmem>>, vector<1x256xf32>
    %5 = vector.broadcast %4 : vector<1x256xf32> to vector<8x256xf32>
    %6 = arith.addf %3, %5 : vector<8x256xf32>
    %cst_5 = arith.constant 0.000000e+00 : f32
    %7 = vector.broadcast %cst_5 : f32 to vector<8x256xf32>
    %8 = arith.maximumf %6, %7 : vector<8x256xf32>
    %9 = arith.truncf %8 : vector<8x256xf32> to vector<8x256xbf16>
    %c0_6 = arith.constant 0 : index
    %c0_7 = arith.constant 0 : index
    %10 = vector.load %arg4[%c0_6, %c0_7] : memref<256x256xbf16, #tpu.memory_space<vmem>>, vector<256x256xbf16>
    %cst_8 = arith.constant dense<0.000000e+00> : vector<8x256xf32>
    %11 = tpu.matmul %9, %10, %cst_8 {dimension_numbers = #tpu.dot_dimension_numbers<[1], [0], [0], [1], [0, 0, 1, 1], [], []>} : vector<8x256xbf16>, vector<256x256xbf16>, vector<8x256xf32> -> vector<8x256xf32>
    %c0_9 = arith.constant 0 : index
    %c0_10 = arith.constant 0 : index
    %12 = vector.load %arg5[%c0_9, %c0_10] : memref<1x256xf32, #tpu.memory_space<vmem>>, vector<1x256xf32>
    %13 = vector.broadcast %12 : vector<1x256xf32> to vector<8x256xf32>
    %14 = arith.addf %11, %13 : vector<8x256xf32>
    %cst_11 = arith.constant 0.000000e+00 : f32
    %15 = vector.broadcast %cst_11 : f32 to vector<8x256xf32>
    %16 = arith.maximumf %14, %15 : vector<8x256xf32>
    %17 = arith.truncf %16 : vector<8x256xf32> to vector<8x256xbf16>
    %c0_12 = arith.constant 0 : index
    %c0_13 = arith.constant 0 : index
    %18 = vector.load %arg6[%c0_12, %c0_13] : memref<256x128xbf16, #tpu.memory_space<vmem>>, vector<256x128xbf16>
    %cst_14 = arith.constant dense<0.000000e+00> : vector<8x128xf32>
    %19 = tpu.matmul %17, %18, %cst_14 {dimension_numbers = #tpu.dot_dimension_numbers<[1], [0], [0], [1], [0, 0, 1, 1], [], []>} : vector<8x256xbf16>, vector<256x128xbf16>, vector<8x128xf32> -> vector<8x128xf32>
    %c0_15 = arith.constant 0 : index
    %c0_16 = arith.constant 0 : index
    %20 = vector.load %arg7[%c0_15, %c0_16] : memref<1x128xf32, #tpu.memory_space<vmem>>, vector<1x128xf32>
    %21 = vector.broadcast %20 : vector<1x128xf32> to vector<8x128xf32>
    %22 = arith.addf %19, %21 : vector<8x128xf32>
    %cst_17 = arith.constant 0.000000e+00 : f32
    %23 = vector.broadcast %cst_17 : f32 to vector<8x128xf32>
    %24 = arith.maximumf %22, %23 : vector<8x128xf32>
    %25 = arith.truncf %24 : vector<8x128xf32> to vector<8x128xbf16>
    %c0_18 = arith.constant 0 : index
    %c0_19 = arith.constant 0 : index
    %26 = vector.load %arg8[%c0_18, %c0_19] : memref<128x128xbf16, #tpu.memory_space<vmem>>, vector<128x128xbf16>
    %cst_20 = arith.constant dense<0.000000e+00> : vector<8x128xf32>
    %27 = tpu.matmul %25, %26, %cst_20 {dimension_numbers = #tpu.dot_dimension_numbers<[1], [0], [0], [1], [0, 0, 1, 1], [], []>} : vector<8x128xbf16>, vector<128x128xbf16>, vector<8x128xf32> -> vector<8x128xf32>
    %c0_21 = arith.constant 0 : index
    %c0_22 = arith.constant 0 : index
    %28 = vector.load %arg9[%c0_21, %c0_22] : memref<1x128xf32, #tpu.memory_space<vmem>>, vector<1x128xf32>
    %29 = vector.broadcast %28 : vector<1x128xf32> to vector<8x128xf32>
    %30 = arith.addf %27, %29 : vector<8x128xf32>
    %31 = arith.truncf %30 : vector<8x128xf32> to vector<8x128xbf16>
    %c0_23 = arith.constant 0 : index
    %c0_24 = arith.constant 0 : index
    %32 = vector.load %arg10[%c0_23, %c0_24] : memref<8x128xbf16, #tpu.memory_space<vmem>>, vector<8x128xbf16>
    tpu.vector_store %arg10[%c0_23, %c0_24], %31 {strides = array<i32>} : memref<8x128xbf16, #tpu.memory_space<vmem>>, vector<8x128xbf16>,
    return
  }
  func.func @transform_0(%arg0: i32) -> (i32, i32) {
    %c0_i32 = arith.constant 0 : i32
    %c0_i32_0 = arith.constant 0 : i32
    return %arg0, %c0_i32 : i32, i32
  }
  func.func @transform_1(%arg0: i32) -> (i32, i32) {
    %c0_i32 = arith.constant 0 : i32
    %c0_i32_0 = arith.constant 0 : i32
    %c0_i32_1 = arith.constant 0 : i32
    return %c0_i32, %c0_i32_0 : i32, i32
  }
  func.func @transform_2(%arg0: i32) -> (i32, i32) {
    %c0_i32 = arith.constant 0 : i32
    %c0_i32_0 = arith.constant 0 : i32
    %c0_i32_1 = arith.constant 0 : i32
    return %c0_i32, %c0_i32_0 : i32, i32
  }
  func.func @transform_3(%arg0: i32) -> (i32, i32) {
    %c0_i32 = arith.constant 0 : i32
    %c0_i32_0 = arith.constant 0 : i32
    %c0_i32_1 = arith.constant 0 : i32
    return %c0_i32, %c0_i32_0 : i32, i32
  }
  func.func @transform_4(%arg0: i32) -> (i32, i32) {
    %c0_i32 = arith.constant 0 : i32
    %c0_i32_0 = arith.constant 0 : i32
    %c0_i32_1 = arith.constant 0 : i32
    return %c0_i32, %c0_i32_0 : i32, i32
  }
  func.func @transform_5(%arg0: i32) -> (i32, i32) {
    %c0_i32 = arith.constant 0 : i32
    %c0_i32_0 = arith.constant 0 : i32
    %c0_i32_1 = arith.constant 0 : i32
    return %c0_i32, %c0_i32_0 : i32, i32
  }
  func.func @transform_6(%arg0: i32) -> (i32, i32) {
    %c0_i32 = arith.constant 0 : i32
    %c0_i32_0 = arith.constant 0 : i32
    %c0_i32_1 = arith.constant 0 : i32
    return %c0_i32, %c0_i32_0 : i32, i32
  }
  func.func @transform_7(%arg0: i32) -> (i32, i32) {
    %c0_i32 = arith.constant 0 : i32
    %c0_i32_0 = arith.constant 0 : i32
    %c0_i32_1 = arith.constant 0 : i32
    return %c0_i32, %c0_i32_0 : i32, i32
  }
  func.func @transform_8(%arg0: i32) -> (i32, i32) {
    %c0_i32 = arith.constant 0 : i32
    %c0_i32_0 = arith.constant 0 : i32
    %c0_i32_1 = arith.constant 0 : i32
    return %c0_i32, %c0_i32_0 : i32, i32
  }
  func.func @transform_9(%arg0: i32) -> (i32, i32) {
    %c0_i32 = arith.constant 0 : i32
    %c0_i32_0 = arith.constant 0 : i32
    return %arg0, %c0_i32 : i32, i32
  }
}

</mosaic_0001>

<bundles_post_ra>
// kernel: tpu_custom_call.1
= control target key start
LH: loop header
LB: loop body
LE: loop exit
PB: predicated region body
PF: predicated region fallthrough
CT: control target
= control target key end

     0   :  { %14 = vsyncpa [#allocation3], 0  ;;  %s1275_s0 = inlined_call_operand.hbm [shape: f32[8,16], index: 0, kind: input, shape index: {}]   ;;  %s1276_s1 = inlined_call_operand.hbm [shape: bf16[16,256], index: 1, kind: input, shape index: {}]   ;;  %s1277_s2 = inlined_call_operand.hbm [shape: f32[1,256], index: 2, kind: input, shape index: {}]   ;;  %s1278_s3 = inlined_call_operand.hbm [shape: bf16[256,256], index: 3, kind: input, shape index: {}]   ;;  %s1279_s4 = inlined_call_operand.vmem [shape: f32[1,256], index: 4, kind: input, shape index: {}]   ;;  %s1280_s5 = inlined_call_operand.hbm [shape: bf16[256,128], index: 5, kind: input, shape index: {}]   ;;  %s1281_s6 = inlined_call_operand.vmem [shape: f32[1,128], index: 6, kind: input, shape index: {}]   ;;  %s1282_s7 = inlined_call_operand.hbm [shape: bf16[128,128], index: 7, kind: input, shape index: {}]   ;;  %s1283_s8 = inlined_call_operand.vmem [shape: f32[1,128], index: 8, kind: input, shape index: {}]   ;;  %s1284_s9 = inlined_call_operand.hbm [shape: bf16[8,128], index: 9, kind: output, shape index: {}]  }
   0x1   :  { %15 = vsyncpa [#allocation6], 0 }
   0x2   :  { %16 = vsyncpa [#allocation9], 0 }
   0x3   :  { %17 = vsyncpa [#allocation12], 0  ;;  %s34_s11 = sshll.u32 %s1276_s1, 4  ;;  %s35_s11 = int_to_ptr.hbm [resolvable:$true] %s34_s11 }
   0x4   :  { %18 = vsyncpa [#allocation4], 0  ;;  %s1178_s12 = smov [#allocation5]   ;;  %s58_s16 = sshll.u32 %s1278_s3, 4  ;;  %s59_s16 = int_to_ptr.hbm [resolvable:$true] %s58_s16 }
   0x5   :  { %s36_s13 = sshll.u32 %s1178_s12, 4  ;;  %s1179_s17 = smov 128   ;;  %s37_s13 = int_to_ptr.vmem [resolvable:$true] %s36_s13 }
   0x6   :  { %s1180_s18 = smov 8   ;;  %s1181_s19 = smov [#allocation8]  }
   0x7   :  { %42 = dma.hbm_to_vmem [thread:$0]  %s35_s11, 256, %s37_s13, [#allocation6], %s1179_s17, %s1179_s17, %s1180_s18  }
   0x8   :  { %s60_s20 = sshll.u32 %s1181_s19, 4  ;;  %s24_s23 = sshll.u32 %s1275_s0, 4  ;;  %s61_s20 = int_to_ptr.vmem [resolvable:$true] %s60_s20  ;;  %s25_s23 = int_to_ptr.hbm [resolvable:$true] %s24_s23 }
   0x9   :  { %66 = dma.hbm_to_vmem [thread:$0]  %s59_s16, 4096, %s61_s20, [#allocation9], %s1179_s17, %s1179_s17, %s1180_s18  }
   0xa   :  { %s48_s25 = sshll.u32 %s1277_s2, 4  ;;  %s1182_s26 = smov [#allocation2]   ;;  %s49_s25 = int_to_ptr.hbm [resolvable:$true] %s48_s25 }
   0xb   :  { %s26_s27 = sshll.u32 %s1182_s26, 4  ;;  %s1183_s3 = smov [#allocation7]   ;;  %s27_s27 = int_to_ptr.vmem [resolvable:$true] %s26_s27 }
   0xc   :  { %29 = dma.hbm_to_vmem [thread:$0]  %s25_s23, 128, %s27_s27, [#allocation3]  }
   0xd   :  { %s50_s28 = sshll.u32 %s1183_s3, 4  ;;  %s73_s10 = sshll.u32 %s1280_s5, 4  ;;  %s51_s28 = int_to_ptr.vmem [resolvable:$true] %s50_s28  ;;  %s74_s10 = int_to_ptr.hbm [resolvable:$true] %s73_s10 }
   0xe   :  { %53 = dma.hbm_to_vmem [thread:$0]  %s49_s25, 32, %s51_s28, [#allocation6]  }
   0xf   :  { %s1184_s0 = smov [#allocation10]   ;;  %s88_s2 = sshll.u32 %s1282_s7, 4  ;;  %s89_s2 = int_to_ptr.hbm [resolvable:$true] %s88_s2 }
  0x10   :  { %s75_s11 = sshll.u32 %s1184_s0, 4  ;;  %s1185_s14 = smov 64   ;;  %s76_s11 = int_to_ptr.vmem [resolvable:$true] %s75_s11 }
  0x11   :  { %s1186_s15 = smov 4   ;;  %s1187_s16 = smov [#allocation11]  }
  0x12   :  { %81 = dma.hbm_to_vmem [thread:$0]  %s74_s10, 2048, %s76_s11, [#allocation9], %s1185_s14, %s1185_s14, %s1186_s15  }
  0x13   :  { %s90_s17 = sshll.u32 %s1187_s16, 4  ;;  %s91_s17 = int_to_ptr.vmem [resolvable:$true] %s90_s17 }
  0x14   :  { %96 = dma.hbm_to_vmem [thread:$0]  %s89_s2, 1024, %s91_s17, [#allocation12], %s1185_s14, %s1185_s14, %s1186_s15  }
  0x15   :  { %1168 = dma.done.wait [#allocation3], 128  }
  0x16   :  { %1169 = vsyncadd [#allocation3], 4294967168 }
  0x17   :  { %1170 = dma.done.wait [#allocation6], 288  }
  0x18   :  { %1171 = vsyncadd [#allocation6], 4294967008 }
  0x19   :  { %1172 = dma.done.wait [#allocation9], 6144  }
  0x1a   :  { %1173 = vsyncadd [#allocation9], 4294961152 }
  0x1b   :  { %1174 = dma.done.wait [#allocation12], 1024  }
  0x1c   :  { %1175 = vsyncadd [#allocation12], 4294966272  ;;  %v697_v0 = vld [vmem:[#allocation5] sm:$0xf]  ;;  %v930_v1 = vld [vmem:[#allocation5 + $0x4] sm:$0xf0] }
  0x1d   :  { %v124_v2 = vld [vmem:[#allocation2] sm:$0xff]  ;;  %vm144_vm0 = vcmask 130048   ;;  %v698_v3 = vor.u32 %v930_v1, %v697_v0  ;;  %v929_v4 = vld [vmem:[#allocation5 + $0x4] sm:$0xf]  ;;  %v699_v5 = vld [vmem:[#allocation5 + $0x8] sm:$0xf0] }
  0x1e   :  { %v763_v6 = vld [vmem:[#allocation8 + $0x70] sm:$0xf]  ;;  %v1257_v7 = vpack.c.bf16 %v124_v2, %v124_v2  ;;  %v702_v8 = vor.u32 %v929_v4, %v699_v5  ;;  %v946_v9 = vld [vmem:[#allocation8 + $0x74] sm:$0xf0]  ;;  %v945_v10 = vld [vmem:[#allocation8 + $0x74] sm:$0xf] }
  0x1f   :  { %v765_v11 = vld [vmem:[#allocation8 + $0x78] sm:$0xf0]  ;;  %155 = vmatpush.bf16.msra.mxu1 %v698_v3  ;;  %v764_v12 = vor.u32 %v946_v9, %v763_v6  ;;  %v755_v14 = vld [vmem:[#allocation8 + $0x60] sm:$0xf]  ;;  %v944_v15 = vld [vmem:[#allocation8 + $0x64] sm:$0xf0] }
  0x20   :  { %v768_v13 = vor.u32 %v945_v10, %v765_v11  ;;  %v943_v16 = vld [vmem:[#allocation8 + $0x64] sm:$0xf]  ;;  %v757_v17 = vld [vmem:[#allocation8 + $0x68] sm:$0xf0]  ;;  %v756_v18 = vor.u32 %v944_v15, %v755_v14  ;;  %v747_v20 = vld [vmem:[#allocation8 + $0x50] sm:$0xf] }
  0x21   :  { %376 = vmatpush.bf16.msra.mxu2 %v764_v12  ;;  %v760_v19 = vor.u32 %v943_v16, %v757_v17  ;;  %v942_v21 = vld [vmem:[#allocation8 + $0x54] sm:$0xf0]  ;;  %v941_v22 = vld [vmem:[#allocation8 + $0x54] sm:$0xf]  ;;  %v749_v23 = vld [vmem:[#allocation8 + $0x58] sm:$0xf0] }
  0x22   :  { %402 = vmatpush.bf16.msra.mxu0 %v768_v13  ;;  %703 = vmatmul.msk.bf16.vlgmr.msra.gmra.mxu1 %vm144_vm0, %v1257_v7  ;;  %v827_v24 = vld [vmem:[#allocation8 + $0xf0] sm:$0xf]  ;;  %v739_v25 = vld [vmem:[#allocation8 + $0x40] sm:$0xf]  ;;  %v940_v26 = vld [vmem:[#allocation8 + $0x44] sm:$0xf0]  ;;  %v748_v28 = vor.u32 %v942_v21, %v747_v20  ;;  %v752_v29 = vor.u32 %v941_v22, %v749_v23 }
  0x23   :  { %168 = vmatpush.bf16.msrb.mxu1 %v702_v8  ;;  %v962_v27 = vld [vmem:[#allocation8 + $0xf4] sm:$0xf0]  ;;  %v939_v30 = vld [vmem:[#allocation8 + $0x44] sm:$0xf]  ;;  %v961_v32 = vld [vmem:[#allocation8 + $0xf4] sm:$0xf]  ;;  %v740_v41 = vor.u32 %v940_v26, %v739_v25 }
  0x24   :  { %v828_v31 = vor.u32 %v962_v27, %v827_v24  ;;  %v829_v33 = vld [vmem:[#allocation8 + $0xf8] sm:$0xf0]  ;;  %v741_v34 = vld [vmem:[#allocation8 + $0x48] sm:$0xf0]  ;;  %v819_v36 = vld [vmem:[#allocation8 + $0xe0] sm:$0xf] }
  0x25   :  { %377 = vmatpush.bf16.msra.mxu2 %v756_v18  ;;  %v832_v35 = vor.u32 %v961_v32, %v829_v33  ;;  %v960_v37 = vld [vmem:[#allocation8 + $0xe4] sm:$0xf0]  ;;  %v959_v39 = vld [vmem:[#allocation8 + $0xe4] sm:$0xf]  ;;  %v821_v40 = vld [vmem:[#allocation8 + $0xe8] sm:$0xf0]  ;;  %v744_v42 = vor.u32 %v939_v30, %v741_v34 }
  0x26   :  { %403 = vmatpush.bf16.msra.mxu0 %v760_v19  ;;  %389 = vmatpush.bf16.msra.mxu3 %v828_v31  ;;  %v820_v38 = vor.u32 %v960_v37, %v819_v36  ;;  %v731_v43 = vld [vmem:[#allocation8 + $0x30] sm:$0xf]  ;;  %v824_v44 = vor.u32 %v959_v39, %v821_v40  ;;  %v938_v45 = vld [vmem:[#allocation8 + $0x34] sm:$0xf0]  ;;  %v937_v46 = vld [vmem:[#allocation8 + $0x34] sm:$0xf] }
  0x27   :  { %415 = vmatpush.bf16.msra.mxu1 %v832_v35  ;;  %v733_v47 = vld [vmem:[#allocation8 + $0x38] sm:$0xf0]  ;;  %v732_v48 = vor.u32 %v938_v45, %v731_v43  ;;  %v723_v50 = vld [vmem:[#allocation8 + $0x20] sm:$0xf]  ;;  %v936_v51 = vld [vmem:[#allocation8 + $0x24] sm:$0xf0] }
  0x28   :  { %v736_v49 = vor.u32 %v937_v46, %v733_v47  ;;  %v935_v52 = vld [vmem:[#allocation8 + $0x24] sm:$0xf]  ;;  %v725_v53 = vld [vmem:[#allocation8 + $0x28] sm:$0xf0]  ;;  %v724_v54 = vor.u32 %v936_v51, %v723_v50  ;;  %v715_v56 = vld [vmem:[#allocation8 + $0x10] sm:$0xf] }
  0x29   :  { %378 = vmatpush.bf16.msra.mxu2 %v748_v28  ;;  %v728_v55 = vor.u32 %v935_v52, %v725_v53  ;;  %v934_v57 = vld [vmem:[#allocation8 + $0x14] sm:$0xf0]  ;;  %v811_v58 = vld [vmem:[#allocation8 + $0xd0] sm:$0xf]  ;;  %v933_v61 = vld [vmem:[#allocation8 + $0x14] sm:$0xf] }
  0x2a   :  { %404 = vmatpush.bf16.msra.mxu0 %v752_v29  ;;  %390 = vmatpush.bf16.msra.mxu3 %v820_v38  ;;  %v716_v59 = vor.u32 %v934_v57, %v715_v56  ;;  %v958_v60 = vld [vmem:[#allocation8 + $0xd4] sm:$0xf0]  ;;  %v717_v62 = vld [vmem:[#allocation8 + $0x18] sm:$0xf0]  ;;  %v957_v1 = vld [vmem:[#allocation8 + $0xd4] sm:$0xf] }
  0x2b   :  { %416 = vmatpush.bf16.msra.mxu1 %v824_v44  ;;  %v812_v63 = vor.u32 %v958_v60, %v811_v58  ;;  %v720_v0 = vor.u32 %v933_v61, %v717_v62  ;;  %v813_v2 = vld [vmem:[#allocation8 + $0xd8] sm:$0xf0]  ;;  %v707_v4 = vld [vmem:[#allocation8] sm:$0xf]  ;;  %v932_v5 = vld [vmem:[#allocation8 + $0x4] sm:$0xf0] }
  0x2c   :  { %v816_v3 = vor.u32 %v957_v1, %v813_v2  ;;  %v803_v6 = vld [vmem:[#allocation8 + $0xc0] sm:$0xf]  ;;  %v956_v8 = vld [vmem:[#allocation8 + $0xc4] sm:$0xf0]  ;;  %v931_v9 = vld [vmem:[#allocation8 + $0x4] sm:$0xf] }
  0x2d   :  { %379 = vmatpush.bf16.msra.mxu2 %v740_v41  ;;  %v709_v10 = vld [vmem:[#allocation8 + $0x8] sm:$0xf0]  ;;  %v804_v11 = vor.u32 %v956_v8, %v803_v6  ;;  %v955_v13 = vld [vmem:[#allocation8 + $0xc4] sm:$0xf]  ;;  %v795_v16 = vld [vmem:[#allocation8 + $0xb0] sm:$0xf] }
  0x2e   :  { %405 = vmatpush.bf16.msra.mxu0 %v744_v42  ;;  %391 = vmatpush.bf16.msra.mxu3 %v812_v63  ;;  %v712_v12 = vor.u32 %v931_v9, %v709_v10  ;;  %v805_v14 = vld [vmem:[#allocation8 + $0xc8] sm:$0xf0]  ;;  %v954_v17 = vld [vmem:[#allocation8 + $0xb4] sm:$0xf0]  ;;  %v953_v18 = vld [vmem:[#allocation8 + $0xb4] sm:$0xf] }
  0x2f   :  { %417 = vmatpush.bf16.msra.mxu1 %v816_v3  ;;  %v808_v15 = vor.u32 %v955_v13, %v805_v14  ;;  %v796_v19 = vor.u32 %v954_v17, %v795_v16  ;;  %v797_v20 = vld [vmem:[#allocation8 + $0xb8] sm:$0xf0]  ;;  %v787_v22 = vld [vmem:[#allocation8 + $0xa0] sm:$0xf]  ;;  %v952_v23 = vld [vmem:[#allocation8 + $0xa4] sm:$0xf0] }
  0x30   :  { %v800_v21 = vor.u32 %v953_v18, %v797_v20  ;;  %v951_v24 = vld [vmem:[#allocation8 + $0xa4] sm:$0xf]  ;;  %v788_v25 = vor.u32 %v952_v23, %v787_v22  ;;  %v789_v26 = vld [vmem:[#allocation8 + $0xa8] sm:$0xf0]  ;;  %v779_v28 = vld [vmem:[#allocation8 + $0x90] sm:$0xf] }
  0x31   :  { %380 = vmatpush.bf16.msra.mxu2 %v732_v48  ;;  %v792_v27 = vor.u32 %v951_v24, %v789_v26  ;;  %v950_v29 = vld [vmem:[#allocation8 + $0x94] sm:$0xf0]  ;;  %v949_v30 = vld [vmem:[#allocation8 + $0x94] sm:$0xf]  ;;  %v781_v32 = vld [vmem:[#allocation8 + $0x98] sm:$0xf0] }
  0x32   :  { %406 = vmatpush.bf16.msra.mxu0 %v736_v49  ;;  %704 = vmatmul.msk.bf16.vlgmr.msrb.gmra.mxu1 %vm144_vm0, %v1257_v7  ;;  %v708_v7 = vor.u32 %v932_v5, %v707_v4  ;;  %v780_v31 = vor.u32 %v950_v29, %v779_v28  ;;  %v784_v33 = vor.u32 %v949_v30, %v781_v32  ;;  %v771_v34 = vld [vmem:[#allocation8 + $0x80] sm:$0xf]  ;;  %v948_v35 = vld [vmem:[#allocation8 + $0x84] sm:$0xf0]  ;;  %v947_v36 = vld [vmem:[#allocation8 + $0x84] sm:$0xf] }
  0x33   :  { %392 = vmatpush.bf16.msra.mxu3 %v804_v11  ;;  %418 = vmatpush.bf16.msra.mxu1 %v808_v15  ;;  %v772_v37 = vor.u32 %v948_v35, %v771_v34  ;;  %v773_v38 = vld [vmem:[#allocation8 + $0x88] sm:$0xf0]  ;;  %v978_v40 = vld [vmem:[#allocation10 + $0x78] sm:$0xff]  ;;  %v977_v43 = vld [vmem:[#allocation10 + $0x70] sm:$0xff]  ;;  %s1188_s21 = smov [#allocation13]   ;;  %s682_s24 = sshll.u32 %s1284_s9, 4  ;;  %s683_s24 = int_to_ptr.hbm [resolvable:$true] %s682_s24 }
  0x34   :  { %v776_v39 = vor.u32 %v947_v36, %v773_v38  ;;  %v970_v41 = vld [vmem:[#allocation10 + $0x38] sm:$0xff]  ;;  %v976_v56 = vld [vmem:[#allocation10 + $0x68] sm:$0xff]  ;;  %v969_v57 = vld [vmem:[#allocation10 + $0x30] sm:$0xff]  ;;  %s680_s22 = sshll.u32 %s1188_s21, 4  ;;  %s681_s22 = int_to_ptr.vmem [resolvable:$true] %s680_s22 }
  0x35   :  { %381 = vmatpush.bf16.msra.mxu2 %v724_v54  ;;  %v128_v42 = vld [vmem:[#allocation7] sm:$0x3]  ;;  %v975_v58 = vld [vmem:[#allocation10 + $0x60] sm:$0xff]  ;;  %v973_v62 = vld [vmem:[#allocation10 + $0x50] sm:$0xff] }
  0x36   :  { %407 = vmatpush.bf16.msra.mxu0 %v728_v55  ;;  %v130_v44 = vperm.slane %v128_v42, 0  ;;  %v131_v50 = vperm.slane %v128_v42, 1  ;;  %v974_v60 = vld [vmem:[#allocation10 + $0x58] sm:$0xff]  ;;  %v967_v61 = vld [vmem:[#allocation10 + $0x20] sm:$0xff]  ;;  %v965_v1 = vld [vmem:[#allocation10 + $0x10] sm:$0xff] }
  0x37   :  { %393 = vmatpush.bf16.msra.mxu3 %v796_v19  ;;  %419 = vmatpush.bf16.msra.mxu1 %v800_v21  ;;  %v966_v63 = vld [vmem:[#allocation10 + $0x18] sm:$0xff]  ;;  %v971_v2 = vld [vmem:[#allocation10 + $0x40] sm:$0xff]  ;;  %v964_v3 = vld [vmem:[#allocation10 + $0x8] sm:$0xff] }
  0x38   :  { %v963_v4 = vld [vmem:[#allocation10] sm:$0xff]  ;;  %v986_v5 = vld [vmem:[#allocation11 + $0x38] sm:$0xff]  ;;  %v984_v8 = vld [vmem:[#allocation11 + $0x28] sm:$0xff] }
  0x39   :  { %382 = vmatpush.bf16.msra.mxu2 %v716_v59  ;;  %v968_v59 = vld [vmem:[#allocation10 + $0x28] sm:$0xff]  ;;  %v210_v10 = vld [vmem:[%s1279_s4] sm:$0x3]  ;;  %v982_v28 = vld [vmem:[#allocation11 + $0x18] sm:$0xff] }
  0x3a   :  { %408 = vmatpush.bf16.msra.mxu0 %v720_v0  ;;  %v972_v0 = vld [vmem:[#allocation10 + $0x48] sm:$0xff]  ;;  %v213_v13 = vperm.slane %v210_v10, 1  ;;  %v212_v17 = vperm.slane %v210_v10, 0  ;;  %v981_v29 = vld [vmem:[#allocation11 + $0x10] sm:$0xff] }
  0x3b   :  { %394 = vmatpush.bf16.msra.mxu3 %v788_v25  ;;  %420 = vmatpush.bf16.msra.mxu1 %v792_v27  ;;  %v980_v30 = vld [vmem:[#allocation11 + $0x8] sm:$0xff] }
  0x3d   :  { %383 = vmatpush.bf16.msra.mxu2 %v708_v7  ;;  %v985_v7 = vld [vmem:[#allocation11 + $0x30] sm:$0xff] }
  0x3e   :  { %409 = vmatpush.bf16.msra.mxu0 %v712_v12  ;;  %v983_v12 = vld [vmem:[#allocation11 + $0x20] sm:$0xff] }
  0x3f   :  { %395 = vmatpush.bf16.msra.mxu3 %v780_v31  ;;  %421 = vmatpush.bf16.msra.mxu1 %v784_v33  ;;  %v979_v31 = vld [vmem:[#allocation11] sm:$0xff] }
  0x40   :  { %v998_v33 = vld [vmem:[%s1281_s6] ss:$0 sm:$0xff] }
  0x41   :  { %564 = vmatpush.bf16.msrb.mxu2 %v970_v41  ;;  %v999_v41 = vld [vmem:[%s1283_s8] ss:$0 sm:$0xff] }
  0x42   :  { %660 = vmatpush.bf16.msrb.mxu0 %v986_v5 }
  0x43   :  { %396 = vmatpush.bf16.msra.mxu3 %v772_v37  ;;  %422 = vmatpush.bf16.msra.mxu1 %v776_v39 }
  0x45   :  { %565 = vmatpush.bf16.msrb.mxu2 %v969_v57 }
  0x46   :  { %661 = vmatpush.bf16.msrb.mxu0 %v985_v7 }
  0x47   :  { %577 = vmatpush.bf16.msrb.mxu3 %v978_v40 }
  0x49   :  { %566 = vmatpush.bf16.msrb.mxu2 %v968_v59 }
  0x4a   :  { %662 = vmatpush.bf16.msrb.mxu0 %v984_v8 }
  0x4b   :  { %578 = vmatpush.bf16.msrb.mxu3 %v977_v43 }
  0x4d   :  { %567 = vmatpush.bf16.msrb.mxu2 %v967_v61 }
  0x4e   :  { %663 = vmatpush.bf16.msrb.mxu0 %v983_v12 }
  0x4f   :  { %579 = vmatpush.bf16.msrb.mxu3 %v976_v56 }
  0x51   :  { %568 = vmatpush.bf16.msrb.mxu2 %v966_v63 }
  0x52   :  { %664 = vmatpush.bf16.msrb.mxu0 %v982_v28 }
  0x53   :  { %580 = vmatpush.bf16.msrb.mxu3 %v975_v58 }
  0x55   :  { %569 = vmatpush.bf16.msrb.mxu2 %v965_v1 }
  0x56   :  { %665 = vmatpush.bf16.msrb.mxu0 %v981_v29 }
  0x57   :  { %581 = vmatpush.bf16.msrb.mxu3 %v974_v60 }
  0x59   :  { %570 = vmatpush.bf16.msrb.mxu2 %v964_v3 }
  0x5a   :  { %666 = vmatpush.bf16.msrb.mxu0 %v980_v30 }
  0x5b   :  { %582 = vmatpush.bf16.msrb.mxu3 %v973_v62 }
  0x5d   :  { %571 = vmatpush.bf16.msrb.mxu2 %v963_v4 }
  0x5e   :  { %667 = vmatpush.bf16.msrb.mxu0 %v979_v31 }
  0x5f   :  { %583 = vmatpush.bf16.msrb.mxu3 %v972_v0 }
  0x63   :  { %584 = vmatpush.bf16.msrb.mxu3 %v971_v2 }
  0x9f   :  { %v157_v45 = vpop.f32.mrf.mxu1 }
  0xa0   :  { %v158_v46 = vadd.f32 %v157_v45, %v130_v44 }
  0xa2   :  { %v174_v47 = vmax.f32 %v158_v46, 0.0 }
  0xa4   :  { %v176_v48 = vpack.c.bf16 %v174_v47, %v174_v47 }
  0xa6   :  { %384 = vmatmul.bf16.vlgmr.msra.gmra.mxu2 %v176_v48  ;;  %410 = vmatmul.bf16.vlgmr.msra.gmra.mxu0 %v176_v48 }
  0xa7   :  { %v159_v49 = vpop.f32.mrf.mxu1 }
  0xaf   :  { %v170_v51 = vpop.f32.mrf.mxu1 }
  0xb0   :  { %v171_v52 = vadd.f32 %v170_v51, %v131_v50 }
  0xb2   :  { %v175_v53 = vmax.f32 %v171_v52, 0.0 }
  0xb4   :  { %v177_v54 = vpack.c.bf16 %v175_v53, %v175_v53 }
  0xb6   :  { %397 = vmatmul.bf16.vlgmr.msra.gmra.mxu3 %v177_v54  ;;  %423 = vmatmul.bf16.vlgmr.msra.gmra.mxu1 %v177_v54 }
  0xb7   :  { %v172_v55 = vpop.f32.mrf.mxu1 }
 0x123   :  { %v411_v6 = vpop.f32.mrf.mxu0 }
 0x124   :  { %v412_v15 = vadd.f32 %v411_v6, %v213_v13 }
 0x129   :  { %v385_v9 = vpop.f32.mrf.mxu2 }
 0x12a   :  { %v386_v20 = vadd.f32 %v385_v9, %v212_v17 }
 0x12b   :  { %v413_v11 = vpop.f32.mrf.mxu0 }
 0x131   :  { %v387_v14 = vpop.f32.mrf.mxu2 }
 0x133   :  { %v424_v16 = vpop.f32.mrf.mxu1 }
 0x134   :  { %v425_v18 = vadd.f32 %v424_v16, %v412_v15 }
 0x136   :  { %v429_v19 = vmax.f32 %v425_v18, 0.0 }
 0x138   :  { %v431_v21 = vpack.c.bf16 %v429_v19, %v429_v19 }
 0x139   :  { %v398_v22 = vpop.f32.mrf.mxu3 }
 0x13a   :  { %v399_v23 = vadd.f32 %v398_v22, %v386_v20  ;;  %585 = vmatmul.bf16.vlgmr.msrb.gmra.mxu3 %v431_v21 }
 0x13b   :  { %v426_v24 = vpop.f32.mrf.mxu1 }
 0x13c   :  { %v428_v25 = vmax.f32 %v399_v23, 0.0 }
 0x13e   :  { %v430_v26 = vpack.c.bf16 %v428_v25, %v428_v25 }
 0x140   :  { %572 = vmatmul.bf16.vlgmr.msrb.gmra.mxu2 %v430_v26 }
 0x141   :  { %v400_v27 = vpop.f32.mrf.mxu3 }
 0x1bd   :  { %v586_v32 = vpop.f32.mrf.mxu3 }
 0x1c3   :  { %v573_v34 = vpop.f32.mrf.mxu2 }
 0x1c4   :  { %v574_v35 = vadd.f32 %v998_v33, %v573_v34 }
 0x1c5   :  { %v588_v36 = vpop.f32.mrf.mxu3 }
 0x1c6   :  { %v587_v37 = vadd.f32 %v586_v32, %v574_v35 }
 0x1c8   :  { %v590_v38 = vmax.f32 %v587_v37, 0.0 }
 0x1ca   :  { %v591_v39 = vpack.c.bf16 %v590_v38, %v590_v38 }
 0x1cb   :  { %v575_v40 = vpop.f32.mrf.mxu2 }
 0x1cc   :  { %668 = vmatmul.bf16.vlgmr.msrb.gmra.mxu0 %v591_v39 }
 0x249   :  { %v669_v42 = vpop.f32.mrf.mxu0 }
 0x24a   :  { %v670_v43 = vadd.f32 %v999_v41, %v669_v42 }
 0x24c   :  { %v673_v44 = vpack.c.bf16 %v670_v43, %v670_v43 }
 0x24e   :  { %674 = vst [vmem:[#allocation13] sm:$0xf] %v673_v44 }
 0x24f   :  { %685 = dma.vmem_to_hbm [thread:$0]  %s681_s22, 64, %s683_s24, [#allocation4]  }
 0x251   :  { %v671_v45 = vpop.f32.mrf.mxu0 }
 0x252   :  { %1176 = dma.done.wait [#allocation4], 64  }
 0x253   :  { %1177 = vsyncadd [#allocation4], 4294967232 }
 0x254   :  { %690 = vsyncpa [#allocation3], 1 }
 0x255   :  { %691 = vsyncpa [#allocation6], 1 }
 0x256   :  { %692 = vsyncpa [#allocation9], 1 }
 0x257   :  { %693 = vsyncpa [#allocation12], 1 }
 0x258   :  { %694 = vsyncpa [#allocation4], 1 }

</bundles_post_ra>
